<compile_context>
chip_gen: v6e
topology: v6e:2x2x1
jax: 0.10.0
libtpu: 0.0.40
codegen_flags: <defaults>
</compile_context>

<pallas_src>
import numpy as np
import jax
import jax.numpy as jnp
from jax.experimental import pallas as pl
from jax.experimental.pallas import tpu as pltpu

# ---------------- static module config (deterministic instantiation) ----------------
QUANT_VALUES = [-1.0, 0.0, 1.0]
N_LEVELS = len(QUANT_VALUES) - 1                                   # n = 2
SCALES = tuple(float(QUANT_VALUES[i + 1] - QUANT_VALUES[i]) for i in range(N_LEVELS))
OFFSET = 0.5 * float(sum(SCALES))                                  # 1.0
QUAN_BIAS = (-0.5, 0.5)                                            # quan_bias init data
BETA = 2.0                                                         # init_beta
ALPHA = 1.0 / BETA                                                 # alpha = 1/beta
# TODO(synk): training-mode sigmoidT branch and data-driven (KMeans) bias/beta
# initialization have no Pallas equivalent here; inference-mode forward only.

# ---------------- tiling config ----------------
_LANE_CANDIDATES = (512, 384, 256, 128)   # lane-dense last dim, multiples of 128


def quantization_kernel(x_ref, o_ref):
    """Elementwise multi-level step quantization (op-for-op reference math).

    x_ref / o_ref : VMEM f32[tile_rows, lane_w]
    """
    x = x_ref[...] * jnp.float32(BETA)
    out = jnp.zeros(x.shape, jnp.float32)
    # n is small and static -> unrolled Python loop over quantization levels
    for i in range(N_LEVELS):
        out = out + jnp.where(x - jnp.float32(QUAN_BIAS[i]) > 0.0,
                              jnp.float32(SCALES[i]), jnp.float32(0.0))
    o_ref[...] = ((out - jnp.float32(OFFSET)) * jnp.float32(ALPHA)).astype(o_ref.dtype)


def _round_up(a, m):
    return -(-a // m) * m


def _max_tile_bytes():
    """Per-step input-tile byte budget, generation-aware."""
    try:
        kind = jax.devices()[0].device_kind.lower()
    except Exception:
        kind = ""
    if "v7" in kind or "7x" in kind:
        # 4 MiB tiles: double-buffered in+out = 16 MiB < 32 MiB scoped-VMEM default
        return 4 << 20
    # v5e (16 MiB scoped default) / v6e: 2 MiB tiles -> 8 MiB double-buffered
    return 2 << 20


def _pick_lane_width(total):
    """Pick a lane-dense last dim that divides `total` exactly if possible."""
    for w in _LANE_CANDIDATES:
        if total % w == 0:
            return w, 0
    # Rare fallback: tail-pad by < 512 floats (costs one small pad + slice).
    w = _LANE_CANDIDATES[0]
    return w, _round_up(total, w) - total


def _choose_tile_rows(rows, lane_w):
    rows_max = max(8, (_max_tile_bytes() // (lane_w * 4)) // 8 * 8)
    # Guarantee >= 2 grid steps whenever the row count allows, so v7x's two
    # TensorCores both get work under dimension_semantics=("parallel",).
    half = _round_up(pl.cdiv(rows, 2), 8)
    tile = min(rows_max, half)
    if tile >= rows:
        return rows        # single full-extent block (legal for any row count)
    return tile            # multiple of 8; ragged last block is masked by Pallas


@jax.jit
def quantization_forward(x_nchw):
    """x_nchw: f32[N, C, H, W] -> f32[N, C, H, W] (inference-mode forward)."""
    orig_shape = x_nchw.shape
    total = int(np.prod(orig_shape))

    lane_w, pad = _pick_lane_width(total)
    rows = (total + pad) // lane_w
    tile_rows = _choose_tile_rows(rows, lane_w)
    grid = pl.cdiv(rows, tile_rows)

    flat = x_nchw.reshape(-1).astype(jnp.float32)
    if pad:
        flat = jnp.pad(flat, (0, pad))
    x2d = flat.reshape(rows, lane_w)

    out2d = pl.pallas_call(
        quantization_kernel,
        out_shape=jax.ShapeDtypeStruct((rows, lane_w), jnp.float32),
        grid_spec=pltpu.PrefetchScalarGridSpec(
            num_scalar_prefetch=0,
            grid=(grid,),
            in_specs=[pl.BlockSpec((tile_rows, lane_w), lambda i: (i, 0))],
            out_specs=pl.BlockSpec((tile_rows, lane_w), lambda i: (i, 0)),
        ),
        compiler_params=pltpu.CompilerParams(
            dimension_semantics=("parallel",)),
        cost_estimate=pl.CostEstimate(
            flops=10 * total, transcendentals=0, bytes_accessed=8 * total),
    )(x2d)

    out = out2d.reshape(-1)
    if pad:
        out = out[:total]
    return out.reshape(orig_shape)


def quantization_reference(x_nchw):
    """Pure-JAX reference mirroring the PyTorch forward (inference branch)."""
    x = x_nchw * BETA
    out = jnp.zeros_like(x)
    for i in range(N_LEVELS):
        out = out + jnp.where(x - QUAN_BIAS[i] > 0.0, 1.0, 0.0) * SCALES[i]
    return (out - OFFSET) * ALPHA


if __name__ == "__main__":
    key = jax.random.PRNGKey(0)
    x = jax.random.normal(key, (2, 4, 16, 16), dtype=jnp.float32)  # NCHW

    y = quantization_forward(x)
    jax.block_until_ready(y)

    y_ref = quantization_reference(x)
    np.testing.assert_allclose(np.asarray(y), np.asarray(y_ref), rtol=1e-6, atol=1e-6)

    print("KERNEL_OK")
</pallas_src>

<mosaic_0001>
module attributes {stable_mosaic.version = 11 : i64} {
  func.func @quantization_kernel(%arg0: i32, %arg1: memref<4x512xf32, #tpu.memory_space<vmem>>, %arg2: memref<4x512xf32, #tpu.memory_space<vmem>>) attributes {dimension_semantics = [#tpu.dimension_semantics<parallel>], iteration_bounds = array<i64: 1>, scalar_prefetch = 0 : i64, scratch_operands = 0 : i64, tpu.core_type = #tpu.core_type<tc>, window_params = [{transform_indices = @transform_0, window_bounds = array<i64: 4, 512>}, {transform_indices = @transform_1, window_bounds = array<i64: 4, 512>}]} {
    %c0 = arith.constant 0 : index
    %c0_0 = arith.constant 0 : index
    %0 = vector.load %arg1[%c0, %c0_0] : memref<4x512xf32, #tpu.memory_space<vmem>>, vector<4x512xf32>
    %cst = arith.constant 2.000000e+00 : f32
    %1 = vector.broadcast %cst : f32 to vector<4x512xf32>
    %2 = arith.mulf %0, %1 : vector<4x512xf32>
    %cst_1 = arith.constant 0.000000e+00 : f32
    %3 = vector.broadcast %cst_1 : f32 to vector<4x512xf32>
    %cst_2 = arith.constant -5.000000e-01 : f32
    %4 = vector.broadcast %cst_2 : f32 to vector<4x512xf32>
    %5 = arith.subf %2, %4 : vector<4x512xf32>
    %cst_3 = arith.constant 0.000000e+00 : f32
    %6 = vector.broadcast %cst_3 : f32 to vector<4x512xf32>
    %7 = arith.cmpf ogt, %5, %6 : vector<4x512xf32>
    %cst_4 = arith.constant 1.000000e+00 : f32
    %cst_5 = arith.constant 0.000000e+00 : f32
    %8 = vector.broadcast %cst_4 : f32 to vector<4x512xf32>
    %9 = vector.broadcast %cst_5 : f32 to vector<4x512xf32>
    %10 = arith.select %7, %8, %9 : vector<4x512xi1>, vector<4x512xf32>
    %11 = arith.addf %3, %10 : vector<4x512xf32>
    %cst_6 = arith.constant 5.000000e-01 : f32
    %12 = vector.broadcast %cst_6 : f32 to vector<4x512xf32>
    %13 = arith.subf %2, %12 : vector<4x512xf32>
    %cst_7 = arith.constant 0.000000e+00 : f32
    %14 = vector.broadcast %cst_7 : f32 to vector<4x512xf32>
    %15 = arith.cmpf ogt, %13, %14 : vector<4x512xf32>
    %cst_8 = arith.constant 1.000000e+00 : f32
    %cst_9 = arith.constant 0.000000e+00 : f32
    %16 = vector.broadcast %cst_8 : f32 to vector<4x512xf32>
    %17 = vector.broadcast %cst_9 : f32 to vector<4x512xf32>
    %18 = arith.select %15, %16, %17 : vector<4x512xi1>, vector<4x512xf32>
    %19 = arith.addf %11, %18 : vector<4x512xf32>
    %cst_10 = arith.constant 1.000000e+00 : f32
    %20 = vector.broadcast %cst_10 : f32 to vector<4x512xf32>
    %21 = arith.subf %19, %20 : vector<4x512xf32>
    %cst_11 = arith.constant 5.000000e-01 : f32
    %22 = vector.broadcast %cst_11 : f32 to vector<4x512xf32>
    %23 = arith.mulf %21, %22 : vector<4x512xf32>
    %c0_12 = arith.constant 0 : index
    %c0_13 = arith.constant 0 : index
    %24 = vector.load %arg2[%c0_12, %c0_13] : memref<4x512xf32, #tpu.memory_space<vmem>>, vector<4x512xf32>
    tpu.vector_store %arg2[%c0_12, %c0_13], %23 {strides = array<i32>} : memref<4x512xf32, #tpu.memory_space<vmem>>, vector<4x512xf32>,
    return
  }
  func.func @transform_0(%arg0: i32) -> (i32, i32) {
    %c0_i32 = arith.constant 0 : i32
    %c0_i32_0 = arith.constant 0 : i32
    return %arg0, %c0_i32 : i32, i32
  }
  func.func @transform_1(%arg0: i32) -> (i32, i32) {
    %c0_i32 = arith.constant 0 : i32
    %c0_i32_0 = arith.constant 0 : i32
    return %arg0, %c0_i32 : i32, i32
  }
}

</mosaic_0001>

<bundles_post_ra>
// kernel: quantization_forward.1
= control target key start
LH: loop header
LB: loop body
LE: loop exit
PB: predicated region body
PF: predicated region fallthrough
CT: control target
= control target key end

     0   :  { %v45_v8 = vmov 0.0   ;;  %s68_s0 = inlined_call_operand.vmem [shape: f32[4,512], index: 0, kind: input, shape index: {}]   ;;  %s69_s1 = inlined_call_operand.vmem [shape: f32[4,512], index: 1, kind: output, shape index: {}]  }
   0x1   :  { %v8_v0 = vld [vmem:[%s68_s0] sm:$0xff]  ;;  %v9_v1 = vld [vmem:[%s68_s0 + $0x8] sm:$0xff] }
   0x2   :  { %v10_v2 = vmul.f32 2.0, %v8_v0  ;;  %v11_v3 = vmul.f32 2.0, %v9_v1 }
   0x4   :  { %v38_v4 = vadd.f32 0.5, %v10_v2  ;;  %v40_v5 = vadd.f32 -0.5, %v10_v2  ;;  %v39_v6 = vadd.f32 0.5, %v11_v3  ;;  %v41_v7 = vadd.f32 -0.5, %v11_v3 }
   0x6   :  { %vm14_vm0 = vcmp.gt.f32.partialorder %v38_v4, 0.0  ;;  %vm22_vm1 = vcmp.gt.f32.partialorder %v40_v5, 0.0  ;;  %vm15_vm2 = vcmp.gt.f32.partialorder %v39_v6, 0.0  ;;  %vm23_vm3 = vcmp.gt.f32.partialorder %v41_v7, 0.0 }
   0x7   :  { %v16_v9 = vsel %vm14_vm0, 1.0, %v45_v8  ;;  %v24_v10 = vsel %vm22_vm1, 1.0, %v45_v8  ;;  %v17_v11 = vsel %vm15_vm2, 1.0, %v45_v8  ;;  %v25_v12 = vsel %vm23_vm3, 1.0, %v45_v8 }
   0x8   :  { %v26_v13 = vadd.f32 %v24_v10, %v16_v9  ;;  %v27_v14 = vadd.f32 %v25_v12, %v17_v11 }
   0xa   :  { %v42_v15 = vadd.f32 -1.0, %v26_v13  ;;  %v43_v16 = vadd.f32 -1.0, %v27_v14 }
   0xc   :  { %v30_v17 = vmul.f32 0.5, %v42_v15  ;;  %v31_v18 = vmul.f32 0.5, %v43_v16 }
   0xe   :  { %32 = vst [vmem:[%s69_s1] sm:$0xff] %v30_v17  ;;  %33 = vst [vmem:[%s69_s1 + $0x8] sm:$0xff] %v31_v18 }

</bundles_post_ra>
